<compile_context>
chip_gen: v6e
topology: v6e:2x2x1
jax: 0.10.0
libtpu: 0.0.40
codegen_flags: <defaults>
</compile_context>

<pallas_src>
import functools

import jax
import jax.numpy as jnp
from jax.experimental import pallas as pl
from jax.experimental.pallas import tpu as pltpu


def _round_up(x, m):
    return (x + m - 1) // m * m


def _mlp_gate(avg, mx, w1_ref, w2_ref):
    """sigmoid(fc2(relu(fc1(avg))) + fc2(relu(fc1(max)))) via one batched matmul/layer."""
    w1 = w1_ref[...].astype(jnp.float32)          # (h, C)
    w2 = w2_ref[...].astype(jnp.float32)          # (C, h)
    c = avg.shape[0]
    # Pack the two pooled column vectors into one (C, 2) operand (no concat op).
    col = jax.lax.broadcasted_iota(jnp.int32, (c, 2), 1)
    pooled = jnp.where(col == 0, avg, mx)         # (C, 2): [:,0]=avg, [:,1]=max
    hid = jnp.maximum(jnp.dot(w1, pooled, preferred_element_type=jnp.float32), 0.0)  # (h, 2)
    y = jnp.dot(w2, hid, preferred_element_type=jnp.float32)                         # (C, 2)
    logit = y[:, 0:1] + y[:, 1:2]                 # (C, 1)
    return jax.nn.sigmoid(logit)                  # (C, 1) f32


# ----------------------- fused one-pass kernel -----------------------

def _fused_kernel(x_ref, w1_ref, w2_ref, o_ref, *, hw_actual, hw_padded):
    x = x_ref[...]                                # (C, HWp), native dtype (no upcast)

    if hw_padded == hw_actual:
        s = jnp.sum(x, axis=1, keepdims=True, dtype=jnp.float32)       # f32 accumulation
        m = jnp.max(x, axis=1, keepdims=True).astype(jnp.float32)
    else:
        lane = jax.lax.broadcasted_iota(jnp.int32, x.shape, 1)
        valid = lane < hw_actual
        s = jnp.sum(jnp.where(valid, x, jnp.zeros_like(x)), axis=1,
                    keepdims=True, dtype=jnp.float32)
        neg = jnp.asarray(-jnp.inf, dtype=x.dtype)
        m = jnp.max(jnp.where(valid, x, neg), axis=1, keepdims=True).astype(jnp.float32)

    avg = s * (1.0 / hw_actual)
    scale = _mlp_gate(avg, m, w1_ref, w2_ref)     # (C, 1) f32
    o_ref[...] = x * scale.astype(x.dtype)        # broadcast gate over lanes


# ----------------------- two-pass split kernels -----------------------

def _pool_mlp_kernel(x_ref, w1_ref, w2_ref, scale_ref, sum_ref, max_ref,
                     *, hw_actual, hw_padded, thw):
    t = pl.program_id(1)
    x = x_ref[...]                                # (C, thw), native dtype

    if hw_padded == hw_actual:
        part_sum = jnp.sum(x, axis=1, keepdims=True, dtype=jnp.float32)
        part_max = jnp.max(x, axis=1, keepdims=True).astype(jnp.float32)
    else:
        lane = jax.lax.broadcasted_iota(jnp.int32, x.shape, 1)
        valid = (t * thw + lane) < hw_actual
        part_sum = jnp.sum(jnp.where(valid, x, jnp.zeros_like(x)), axis=1,
                           keepdims=True, dtype=jnp.float32)
        neg = jnp.asarray(-jnp.inf, dtype=x.dtype)
        part_max = jnp.max(jnp.where(valid, x, neg), axis=1,
                           keepdims=True).astype(jnp.float32)

    @pl.when(t == 0)
    def _():
        sum_ref[...] = jnp.zeros_like(sum_ref)
        max_ref[...] = jnp.full_like(max_ref, -jnp.inf)

    sum_ref[...] = sum_ref[...] + part_sum
    max_ref[...] = jnp.maximum(max_ref[...], part_max)

    @pl.when(t == pl.num_programs(1) - 1)
    def _():
        avg = sum_ref[...] * (1.0 / hw_actual)
        scale_ref[...] = _mlp_gate(avg, max_ref[...], w1_ref, w2_ref).astype(scale_ref.dtype)


def _apply_scale_kernel(x_ref, scale_ref, o_ref):
    x = x_ref[...]                                # (C, thw)
    o_ref[...] = x * scale_ref[...].astype(x.dtype)


# ----------------------------- wrapper -----------------------------

def channel_attention(x, w1, w2, *, force_split=False, thw=None):
    """x: (N, C, H, W); w1: (C//r, C); w2: (C, C//r). Matches PyTorch ChannelAttention."""
    N, C, H, W = x.shape
    HW = H * W
    h = w1.shape[0]
    itemsize = jnp.dtype(x.dtype).itemsize

    # Lane-dense spatial axis: pad HW up to a multiple of 128 (unmasked stores).
    HWp = _round_up(HW, 128)
    xr = x.reshape(N, C, HW)
    if HWp != HW:
        xr = jnp.pad(xr, ((0, 0), (0, 0), (0, HWp - HW)))

    # Explicit VMEM budget (v7x: 64 MiB, v5e/v6e: 128 MiB physical). Leave headroom.
    try:
        vmem_cap = getattr(pltpu.get_tpu_info(), "vmem_capacity_bytes", 64 << 20)
    except Exception:  # pragma: no cover - conservative fallback
        vmem_cap = 64 << 20
    budget = int(vmem_cap * 3 // 4)

    w_bytes = 2 * (w1.size * jnp.dtype(w1.dtype).itemsize +
                   w2.size * jnp.dtype(w2.dtype).itemsize)
    slab_bytes = C * HWp * itemsize
    # double-buffered input + double-buffered output + weights + margin
    fused_peak = 4 * slab_bytes + 2 * w_bytes + (2 << 20)

    if not force_split and fused_peak <= budget:
        # ---- fused one-pass path: minimal 1R + 1W HBM traffic ----
        kern = functools.partial(_fused_kernel, hw_actual=HW, hw_padded=HWp)
        out = pl.pallas_call(
            kern,
            out_shape=jax.ShapeDtypeStruct((N, C, HWp), x.dtype),
            grid=(N,),
            in_specs=[
                pl.BlockSpec((pl.Squeezed(), C, HWp), lambda n: (n, 0, 0)),
                pl.BlockSpec((h, C), lambda n: (0, 0)),
                pl.BlockSpec((C, h), lambda n: (0, 0)),
            ],
            out_specs=pl.BlockSpec((pl.Squeezed(), C, HWp), lambda n: (n, 0, 0)),
            compiler_params=pltpu.CompilerParams(
                dimension_semantics=("parallel",),
                vmem_limit_bytes=int(min(max(fused_peak, 16 << 20), budget))),
        )(xr, w1, w2)
    else:
        # ---- two-pass split: pool+MLP over HW tiles, then lane-dense scale ----
        if thw is None:
            thw = min(HWp, 2048)
        thw = _round_up(thw, 128)
        HWt = _round_up(HWp, thw)
        if HWt != HWp:
            xr = jnp.pad(xr, ((0, 0), (0, 0), (0, HWt - HWp)))
        n_tiles = HWt // thw
        tile_peak = 4 * C * thw * itemsize + 2 * w_bytes + (2 << 20)
        vmem_lim = int(min(max(tile_peak, 16 << 20), budget))

        pool_kern = functools.partial(_pool_mlp_kernel, hw_actual=HW,
                                      hw_padded=HWt, thw=thw)
        scale = pl.pallas_call(
            pool_kern,
            out_shape=jax.ShapeDtypeStruct((N, C, 1), jnp.float32),
            grid=(N, n_tiles),
            in_specs=[
                pl.BlockSpec((pl.Squeezed(), C, thw), lambda n, t: (n, 0, t)),
                pl.BlockSpec((h, C), lambda n, t: (0, 0)),
                pl.BlockSpec((C, h), lambda n, t: (0, 0)),
            ],
            out_specs=pl.BlockSpec((pl.Squeezed(), C, 1), lambda n, t: (n, 0, 0)),
            scratch_shapes=[pltpu.VMEM((C, 1), jnp.float32),
                            pltpu.VMEM((C, 1), jnp.float32)],
            compiler_params=pltpu.CompilerParams(
                dimension_semantics=("parallel", "arbitrary"),
                vmem_limit_bytes=vmem_lim),
        )(xr, w1, w2)

        out = pl.pallas_call(
            _apply_scale_kernel,
            out_shape=jax.ShapeDtypeStruct((N, C, HWt), x.dtype),
            grid=(N, n_tiles),
            in_specs=[
                pl.BlockSpec((pl.Squeezed(), C, thw), lambda n, t: (n, 0, t)),
                pl.BlockSpec((pl.Squeezed(), C, 1), lambda n, t: (n, 0, 0)),
            ],
            out_specs=pl.BlockSpec((pl.Squeezed(), C, thw), lambda n, t: (n, 0, t)),
            compiler_params=pltpu.CompilerParams(
                dimension_semantics=("parallel", "parallel"),
                vmem_limit_bytes=vmem_lim),
        )(xr, scale)

    return out[:, :, :HW].reshape(N, C, H, W)


def channel_attention_ref(x, w1, w2):
    """Pure-JAX reference matching the PyTorch forward."""
    avg = jnp.mean(x, axis=(2, 3), keepdims=True)   # (N,C,1,1)
    mx = jnp.max(x, axis=(2, 3), keepdims=True)     # (N,C,1,1)

    def mlp(v):
        v = v[:, :, 0, 0]                            # (N,C)
        hdn = jnp.maximum(v @ w1.T, 0.0)             # (N,h)
        return (hdn @ w2.T)[:, :, None, None]        # (N,C,1,1)

    scale = jax.nn.sigmoid(mlp(avg) + mlp(mx))
    return x * scale


if __name__ == "__main__":
    key = jax.random.PRNGKey(0)
    kx, k1, k2 = jax.random.split(key, 3)

    N, C, H, W = 2, 32, 16, 16
    ratio = 16
    hidden = C // ratio  # = 2

    x = jax.random.normal(kx, (N, C, H, W), dtype=jnp.float32)
    # Deterministic "kaiming-ish" init for the two 1x1 conv weights (no bias).
    w1 = jax.random.normal(k1, (hidden, C), dtype=jnp.float32) * (2.0 / C) ** 0.5
    w2 = jax.random.normal(k2, (C, hidden), dtype=jnp.float32) * (2.0 / hidden) ** 0.5

    # 1) fused one-pass path (slab fits the VMEM budget).
    out = jax.block_until_ready(channel_attention(x, w1, w2))
    ref = channel_attention_ref(x, w1, w2)
    assert out.shape == (N, C, H, W)
    assert jnp.allclose(out, ref, atol=1e-5, rtol=1e-5), "fused path mismatch"

    # 2) bf16 slab stays bf16 inside the kernel (pooling still accumulates in f32).
    xb = x.astype(jnp.bfloat16)
    out_b = jax.block_until_ready(channel_attention(xb, w1, w2))
    ref_b = channel_attention_ref(xb.astype(jnp.float32), w1, w2)
    assert jnp.allclose(out_b.astype(jnp.float32), ref_b, atol=3e-2, rtol=3e-2), "bf16 mismatch"

    # 3) non-multiple-of-128 spatial size (lane padding + masked pooling).
    x2 = jax.random.normal(kx, (1, C, 10, 13), dtype=jnp.float32)
    out2 = jax.block_until_ready(channel_attention(x2, w1, w2))
    ref2 = channel_attention_ref(x2, w1, w2)
    assert jnp.allclose(out2, ref2, atol=1e-5, rtol=1e-5), "padded fused path mismatch"

    # 4) forced two-pass split path (what a VMEM-exceeding C*HW would use, e.g. v7x).
    x3 = jax.random.normal(kx, (2, C, 15, 20), dtype=jnp.float32)  # HW=300 -> 3 tiles of 128
    out3 = jax.block_until_ready(channel_attention(x3, w1, w2, force_split=True, thw=128))
    ref3 = channel_attention_ref(x3, w1, w2)
    assert jnp.allclose(out3, ref3, atol=1e-5, rtol=1e-5), "split path mismatch"

    print("KERNEL_OK")
</pallas_src>

<mosaic_0001>
module attributes {stable_mosaic.version = 11 : i64} {
  func.func @_fused_kernel(%arg0: i32, %arg1: memref<1x32x256xf32, #tpu.memory_space<vmem>>, %arg2: memref<2x32xf32, #tpu.memory_space<vmem>>, %arg3: memref<32x2xf32, #tpu.memory_space<vmem>>, %arg4: memref<1x32x256xf32, #tpu.memory_space<vmem>>) attributes {dimension_semantics = [#tpu.dimension_semantics<parallel>], iteration_bounds = array<i64: 2>, scalar_prefetch = 0 : i64, scratch_operands = 0 : i64, tpu.core_type = #tpu.core_type<tc>, window_params = [{transform_indices = @transform_0, window_bounds = array<i64: 1, 32, 256>}, {pipeline_mode = #tpu.pipeline_mode<synchronous>, transform_indices = @transform_1, window_bounds = array<i64: 2, 32>}, {pipeline_mode = #tpu.pipeline_mode<synchronous>, transform_indices = @transform_2, window_bounds = array<i64: 32, 2>}, {transform_indices = @transform_3, window_bounds = array<i64: 1, 32, 256>}]} {
    %c0 = arith.constant 0 : index
    %c0_0 = arith.constant 0 : index
    %c0_1 = arith.constant 0 : index
    %0 = vector.load %arg1[%c0, %c0_0, %c0_1] : memref<1x32x256xf32, #tpu.memory_space<vmem>>, vector<1x32x256xf32>
    %1 = vector.shape_cast %0 : vector<1x32x256xf32> to vector<32x256xf32>
    %cst = arith.constant dense<0.000000e+00> : vector<32xf32>
    %2 = vector.multi_reduction <add>, %1, %cst [1] : vector<32x256xf32> to vector<32xf32>
    %3 = vector.shape_cast %2 : vector<32xf32> to vector<32x1xf32>
    %cst_2 = arith.constant dense<0xFF800000> : vector<32xf32>
    %4 = vector.multi_reduction <maximumf>, %1, %cst_2 [1] : vector<32x256xf32> to vector<32xf32>
    %5 = vector.shape_cast %4 : vector<32xf32> to vector<32x1xf32>
    %cst_3 = arith.constant 3.906250e-03 : f32
    %6 = vector.broadcast %cst_3 : f32 to vector<32x1xf32>
    %7 = arith.mulf %3, %6 : vector<32x1xf32>
    %c0_4 = arith.constant 0 : index
    %c0_5 = arith.constant 0 : index
    %8 = vector.load %arg2[%c0_4, %c0_5] : memref<2x32xf32, #tpu.memory_space<vmem>>, vector<2x32xf32>
    %c0_6 = arith.constant 0 : index
    %c0_7 = arith.constant 0 : index
    %9 = vector.load %arg3[%c0_6, %c0_7] : memref<32x2xf32, #tpu.memory_space<vmem>>, vector<32x2xf32>
    %10 = tpu.iota {dimensions = array<i32: 1>} : vector<32x2xi32>
    %c0_i32 = arith.constant 0 : i32
    %11 = vector.broadcast %c0_i32 : i32 to vector<32x2xi32>
    %12 = arith.cmpi eq, %10, %11 : vector<32x2xi32>
    %13 = vector.shape_cast %7 : vector<32x1xf32> to vector<32x1xf32>
    %14 = vector.broadcast %13 : vector<32x1xf32> to vector<32x2xf32>
    %15 = vector.shape_cast %5 : vector<32x1xf32> to vector<32x1xf32>
    %16 = vector.broadcast %15 : vector<32x1xf32> to vector<32x2xf32>
    %17 = arith.select %12, %14, %16 : vector<32x2xi1>, vector<32x2xf32>
    %cst_8 = arith.constant dense<0.000000e+00> : vector<2x2xf32>
    %18 = tpu.matmul %8, %17, %cst_8 {dimension_numbers = #tpu.dot_dimension_numbers<[1], [0], [0], [1], [0, 0, 1, 1], [], []>} : vector<2x32xf32>, vector<32x2xf32>, vector<2x2xf32> -> vector<2x2xf32>
    %cst_9 = arith.constant 0.000000e+00 : f32
    %19 = vector.broadcast %cst_9 : f32 to vector<2x2xf32>
    %20 = arith.maximumf %18, %19 : vector<2x2xf32>
    %cst_10 = arith.constant dense<0.000000e+00> : vector<32x2xf32>
    %21 = tpu.matmul %9, %20, %cst_10 {dimension_numbers = #tpu.dot_dimension_numbers<[1], [0], [0], [1], [0, 0, 1, 1], [], []>} : vector<32x2xf32>, vector<2x2xf32>, vector<32x2xf32> -> vector<32x2xf32>
    %22 = vector.extract_strided_slice %21 {offsets = [0, 0], sizes = [32, 1], strides = [1, 1]} : vector<32x2xf32> to vector<32x1xf32>
    %23 = vector.extract_strided_slice %21 {offsets = [0, 1], sizes = [32, 1], strides = [1, 1]} : vector<32x2xf32> to vector<32x1xf32>
    %24 = arith.addf %22, %23 : vector<32x1xf32>
    %25 = arith.negf %24 : vector<32x1xf32>
    %26 = math.exp %25 : vector<32x1xf32>
    %cst_11 = arith.constant 1.000000e+00 : f32
    %27 = vector.broadcast %cst_11 : f32 to vector<32x1xf32>
    %28 = arith.addf %27, %26 : vector<32x1xf32>
    %29 = arith.divf %27, %28 : vector<32x1xf32>
    %30 = vector.broadcast %29 : vector<32x1xf32> to vector<32x256xf32>
    %31 = arith.mulf %1, %30 : vector<32x256xf32>
    %c0_12 = arith.constant 0 : index
    %c0_13 = arith.constant 0 : index
    %c0_14 = arith.constant 0 : index
    %32 = vector.load %arg4[%c0_12, %c0_13, %c0_14] : memref<1x32x256xf32, #tpu.memory_space<vmem>>, vector<1x32x256xf32>
    %33 = vector.shape_cast %32 : vector<1x32x256xf32> to vector<32x256xf32>
    %34 = vector.shape_cast %31 : vector<32x256xf32> to vector<1x32x256xf32>
    tpu.vector_store %arg4[%c0_12, %c0_13, %c0_14], %34 {strides = array<i32>} : memref<1x32x256xf32, #tpu.memory_space<vmem>>, vector<1x32x256xf32>,
    return
  }
  func.func @transform_0(%arg0: i32) -> (i32, i32, i32) {
    %c0_i32 = arith.constant 0 : i32
    %c0_i32_0 = arith.constant 0 : i32
    %c0_i32_1 = arith.constant 0 : i32
    return %arg0, %c0_i32, %c0_i32_0 : i32, i32, i32
  }
  func.func @transform_1(%arg0: i32) -> (i32, i32) {
    %c0_i32 = arith.constant 0 : i32
    %c0_i32_0 = arith.constant 0 : i32
    %c0_i32_1 = arith.constant 0 : i32
    return %c0_i32, %c0_i32_0 : i32, i32
  }
  func.func @transform_2(%arg0: i32) -> (i32, i32) {
    %c0_i32 = arith.constant 0 : i32
    %c0_i32_0 = arith.constant 0 : i32
    %c0_i32_1 = arith.constant 0 : i32
    return %c0_i32, %c0_i32_0 : i32, i32
  }
  func.func @transform_3(%arg0: i32) -> (i32, i32, i32) {
    %c0_i32 = arith.constant 0 : i32
    %c0_i32_0 = arith.constant 0 : i32
    %c0_i32_1 = arith.constant 0 : i32
    return %arg0, %c0_i32, %c0_i32_0 : i32, i32, i32
  }
}

</mosaic_0001>

<bundles_post_ra>
// kernel: tpu_custom_call.1
= control target key start
LH: loop header
LB: loop body
LE: loop exit
PB: predicated region body
PF: predicated region fallthrough
CT: control target
= control target key end

     0   :  { %8 = vsyncpa [#allocation3], 0  ;;  %s1049_s0 = inlined_call_operand.hbm [shape: f32[2,32,256], index: 0, kind: input, shape index: {}]   ;;  %s1050_s1 = inlined_call_operand.vmem [shape: f32[2,32], index: 1, kind: input, shape index: {}]   ;;  %s1051_s2 = inlined_call_operand.vmem [shape: f32[32,2], index: 2, kind: input, shape index: {}]   ;;  %s1052_s3 = inlined_call_operand.hbm [shape: f32[2,32,256], index: 3, kind: output, shape index: {}]  }
   0x1   :  { %10 = vsyncpa [#allocation3 + $0x1], 0 }
   0x2   :  { %11 = vsyncpa [#allocation4], 0 }
   0x3   :  { %13 = vsyncpa [#allocation4 + $0x1], 0  ;;  %s832_s12 = smov 0   ;;  %s834_s13 = smov 0  }
   0x4   :  { %s836_s14 = smov 0   ;;  %s838_s15 = smov 0  }
   0x5 LB: > { %s853_s16 = sadd.s32 4294967295, %s800_s15   ;;  %s581_s17 = sadd.s32 4294967294, %s800_s15   ;;  %s800_s15 = sphi %s838_s15, %s1067_s15   ;;  %s796_s14 = sphi %s836_s14, %s1066_s14   ;;  %s792_s13 = sphi %s834_s13, %s1065_s13   ;;  %s788_s12 = sphi %s832_s12, %s1064_s12  }
   0x6   : > { %s857_s18 = sadd.s32 1, %s800_s15   ;;  %s26_s19 = sadd.s32 1, %s796_s14 }
   0x7   : > { %s23_s20 = ssub.s32 %s800_s15, %s857_s18  ;;  %p33_p0 = scmp.ne.s32.totalorder %s796_s14, %s792_s13 }
   0x8   : > { %p24_p1 = scmp.eq.s32.totalorder %s23_s20, 0  ;;  %p34_p2 = scmp.eq.s32.totalorder %s800_s15, 0 }
   0x9   : > { %p39_p3 = scmp.ne.s32.totalorder %s792_s13, %s788_s12  ;;  %p40_p4 = scmp.eq.s32.totalorder %s853_s16, 0 }
   0xa   : > { %s869_s21 = scalar_select %p24_p1, %s796_s14, %s26_s19  }
   0xb   : > { %p871_p5 = por %p34_p2, %p33_p0  ;;  %p875_p6 = por %p40_p4, %p39_p3 }
   0xc   : > { %p105_p7 = scmp.eq.s32.totalorder %s853_s16, 1  ;;  %p111_p8 = scmp.eq.s32.totalorder %s581_s17, 1 }
   0xd   : > { %s1056_s23 = scalar_select %p875_p6, 1, 0 }
   0xe   : > { %p648_p10 = scmp.lt.s32.totalorder %s800_s15, 2  ;;  %p882_p11 = por %p105_p7, %p33_p0 }
   0xf   : > { %p886_p12 = por %p111_p8, %p39_p3  ;;  %s137_s26 = sand.u32 1, %s796_s14  }
  0x10   : > { %s1057_s24 = scalar_select %p882_p11, 1, 0 }
  0x11   : > { %s1058_s25 = scalar_select %p886_p12, 1, 0 }
  0x12   : > { %s605_s27 = sshll.u32 %s800_s15, 10  ;;  %s584_s28 = sshll.u32 %s137_s26, 6 }
  0x13   : > { %s895_s4 = scalar_lea.hbm %s1049_s0, %s605_s27  ;;  %s141_s5 = scalar_lea.vmem [#allocation2], %s584_s28 }
  0x14   : > { %s148_s6 = sshll.u32 %s141_s5, 4  ;;  %p899_p13 = pnand %p648_p10, %p871_p5  ;;  %s903_s6 = int_to_ptr.vmem [resolvable:$true] %s148_s6 }
  0x15   : > { %s905_s8 = scalar_lea.sflag [#allocation3], %s137_s26  ;;  %s708_s9 = scalar_lea.hbm %s895_s4, 1024 }
  0x16   : > { %p709_p0 = scmp.ne.s32.totalorder %s895_s4, %s708_s9  ;;  %p710_p1 = pneg %p899_p13 }
  0x17   : > { %s713_s17 = scalar_lea.hbm %s1049_s0, 2048  ;;  %p714_p4 = scmp.lt.s32.totalorder %s895_s4, %s1049_s0 }
  0x18   : > { %p711_p2 = pnand %p710_p1, %p709_p0  ;;  %p715_p5 = scmp.lt.s32.totalorder %s713_s17, %s708_s9 }
  0x1a   : > { %p712_p3 = pneg %p711_p2  ;;  %p716_p7 = por %p715_p5, %p714_p4 }
  0x1c   : > { %p717_p8 = pnand %p716_p7, %p712_p3 }
  0x1e   : > { %720 = shalt.err (!%p717_p8)
}
  0x1f   : > { %s721_s22 = scalar_lea.vmem %s903_s6, 1024  ;;  %s802_s26 = smov [#allocation2]  }
  0x20   : > { %p722_p10 = scmp.ne.s32.totalorder %s903_s6, %s721_s22  ;;  %s726_s27 = sshll.u32 %s802_s26, 4  ;;  %s727_s27 = int_to_ptr.vmem [resolvable:$false] %s726_s27 }
  0x21   : > { %s728_s28 = scalar_lea.vmem %s727_s27, 2048  ;;  %p729_p2 = scmp.lt.s32.totalorder %s903_s6, %s727_s27 }
  0x22   : > { %p724_p9 = pnand %p722_p10, %p710_p1  ;;  %p730_p12 = scmp.lt.s32.totalorder %s728_s28, %s721_s22 }
  0x24   : > { %p725_p0 = pneg %p724_p9  ;;  %p731_p11 = por %p730_p12, %p729_p2 }
  0x26   : > { %p732_p6 = pnand %p731_p11, %p725_p0 }
  0x28   : > { %735 = shalt.err (!%p732_p6)
}
  0x29   : > { %s803_s29 = smov 256   ;;  %s804_s30 = smov 16  }
  0x2a   : > { %643 = dma.hbm_to_vmem [thread:$0]  (!%p899_p13), %s895_s4, 1024, %s903_s6, %s905_s8, %s803_s29, %s803_s29, %s804_s30  }
  0x2b   : > { %p587_p9 = scmp.ge.s32.totalorder %s800_s15, 1  ;;  %p156_p1 = scmp.lt.s32.totalorder %s800_s15, 3 }
  0x2d   : > { %p157_p3 = pnand %p587_p9, %p156_p1 }
  0x2e   : > { %s929_s5 = sand.u32 (!%p157_p3), 1, %s792_s13   ;;  %p1060_p6 = scmp.ne.s32.totalorder (!%p157_p3), %s1056_s23, 0 }
  0x2f   : > { %160 = sbr.rel (%p157_p3) target bundleno = 899 (0x383), region = 32  ;;  %s588_s9 = sshll.u32 (!%p157_p3), %s929_s5, 6 }
  0x30   : > { %s163_s10 = scalar_lea.sflag (!%p157_p3), [#allocation3], %s929_s5  ;;  %s166_s11 = scalar_lea.vmem (!%p157_p3), [#allocation2], %s588_s9 }
  0x34   : > { %779 = dma.done.wait (%p1060_p6), %s163_s10, 1024  }
  0x35   : > { %781 = vsyncadd (%p1060_p6), %s163_s10, 4294966272  ;;  %v939_v0 = vld [vmem:[%s166_s11 + $0x30] sm:$0xff]  ;;  %v941_v1 = vld [vmem:[%s166_s11 + $0x38] sm:$0xff]  ;;  %v805_v16 = vmov 0.0   ;;  %vm806_vm0 = vmmov 0   ;;  %v230_v17 = vlaneseq  ;;  %vm237_vm2 = vcmask 261120  }
  0x36   : > { %v943_v2 = vld [vmem:[%s166_s11 + $0x20] sm:$0xff]  ;;  %v218_v3 = vmax.f32 %v939_v0, %v941_v1  ;;  %v206_v4 = vadd.f32 %v941_v1, %v939_v0  ;;  %v949_v5 = vld [vmem:[%s166_s11 + $0x28] sm:$0xff]  ;;  %v951_v6 = vld [vmem:[%s166_s11 + $0x10] sm:$0xff]  ;;  %617 = vmatprep.subr.mxu0 %v805_v16  ;;  %625 = vmatprep.mubr.msk.f32.mxu0 %vm806_vm0, %v805_v16  ;;  %vm312_vm3 = vcmask 15360   ;;  %vm325_vm4 = vcmask 1041408   ;;  %s807_s27 = smov 127  }
  0x37   : > { %v953_v7 = vld [vmem:[%s166_s11 + $0x18] sm:$0xff]  ;;  %v203_v8 = vadd.f32 %v949_v5, %v943_v2  ;;  %v959_v10 = vld [vmem:[%s166_s11] sm:$0xff]  ;;  %v961_v11 = vld [vmem:[%s166_s11 + $0x8] sm:$0xff]  ;;  %v215_v12 = vmax.f32 %v943_v2, %v949_v5  ;;  %v231_v18 = vand.u32 127, %v230_v17  ;;  %v808_v47 = vmov 0   ;;  %s188_s28 = scalar_lea.vmem [#allocation5], %s588_s9 }
  0x38   : > { %219 = vmax.xlane.f32.xlu1 %v218_v3  ;;  %207 = vadd.xlane.f32.xlu0 %v206_v4  ;;  %v200_v9 = vadd.f32 %v953_v7, %v951_v6  ;;  %v197_v13 = vadd.f32 %v961_v11, %v959_v10  ;;  %v212_v14 = vmax.f32 %v951_v6, %v953_v7  ;;  %v225_v34 = vld [vmem:[%s1050_s1] sm:$0x3]  ;;  %v227_v40 = vld [vmem:[%s1051_s2 + $0x8] sm:$0xff]  ;;  %v228_v41 = vld [vmem:[%s1051_s2 + $0x10] sm:$0xff]  ;;  %s508_s29 = sshll.u32 %s188_s28, 4  ;;  %s606_s30 = sshll.u32 %s853_s16, 10  ;;  %s999_s29 = int_to_ptr.vmem [resolvable:$true] %s508_s29 }
  0x39   : > { %v209_v15 = vmax.f32 %v959_v10, %v961_v11  ;;  %vm232_vm1 = vcmp.eq.s32.totalorder %v231_v18, 0  ;;  %v226_v36 = vld [vmem:[%s1051_s2] sm:$0xff]  ;;  %v229_v42 = vld [vmem:[%s1051_s2 + $0x18] sm:$0xff]  ;;  %690 = vset.pattern.permute.xlu1 %v808_v47  ;;  %691 = vset.pattern.permute.xlu0 %v808_v47  ;;  %s1004_s11 = scalar_lea.hbm %s1052_s3, %s606_s30  ;;  %s495_s16 = scalar_lea.sflag [#allocation4], %s929_s5 }
  0x3a   : > { %630 = vmatprep.mubr.msk.f32.mxu1 %vm312_vm3, %v226_v36  ;;  %s736_s23 = scalar_lea.vmem %s999_s29, 1024  ;;  %p1061_p12 = scmp.ne.s32.totalorder %s1057_s24, 0 }
  0x3b   : > { %p737_p11 = scmp.ne.s32.totalorder %s999_s29, %s736_s23  ;;  %s809_s4 = smov [#allocation5]  }
  0x3c   : > { %204 = vadd.xlane.f32.xlu0 %v203_v8  ;;  %201 = vadd.xlane.f32.xlu1 %v200_v9  ;;  %s740_s6 = sshll.u32 %s809_s4, 4  ;;  %s741_s6 = int_to_ptr.vmem [resolvable:$false] %s740_s6 }
  0x3d   : > { %p738_p13 = pnand %p737_p11, %p1061_p12  ;;  %s742_s7 = scalar_lea.vmem %s741_s6, 2048 }
  0x3e   : > { %p743_p5 = scmp.lt.s32.totalorder %s999_s29, %s741_s6  ;;  %p744_p7 = scmp.lt.s32.totalorder %s742_s7, %s736_s23 }
  0x3f   : > { %p739_p4 = pneg %p738_p13 }
  0x40   : > { %216 = vmax.xlane.f32.xlu0 %v215_v12  ;;  %198 = vadd.xlane.f32.xlu1 %v197_v13  ;;  %p745_p8 = por %p744_p7, %p743_p5 }
  0x42   : > { %p746_p10 = pnand %p745_p8, %p739_p4 }
  0x44   : > { %213 = vmax.xlane.f32.xlu0 %v212_v14  ;;  %210 = vmax.xlane.f32.xlu1 %v209_v15 }
  0xc1   : > { %v220_v19 = vpop.xlane.xlu1 %219  ;;  %v208_v20 = vpop.xlane.xlu0 %207 }
  0xc2   : > { %v224_v21 = vmul.f32 0.00390625, %v208_v20 }
  0xc4   : > { %v236_v22 = vsel %vm232_vm1, %v224_v21, %v220_v19 }
  0xc5   : > { %618 = vmatpush3.msra.mxu0 %v236_v22  ;;  %v205_v23 = vpop.xlane.xlu0 %204  ;;  %v202_v24 = vpop.xlane.xlu1 %201 }
  0xc6   : > { %619 = vmatprep.subr.mxu0 %v805_v16  ;;  %v223_v25 = vmul.f32 0.00390625, %v205_v23  ;;  %v222_v29 = vmul.f32 0.00390625, %v202_v24 }
  0xc9   : > { %v217_v26 = vpop.xlane.xlu0 %216  ;;  %v199_v27 = vpop.xlane.xlu1 %198 }
  0xca   : > { %v235_v28 = vsel %vm232_vm1, %v223_v25, %v217_v26  ;;  %v221_v30 = vmul.f32 0.00390625, %v199_v27 }
  0xcb   : > { %620 = vmatpush3.msra.mxu0 %v235_v28 }
  0xcc   : > { %621 = vmatprep.subr.mxu0 %v805_v16 }
  0xcd   : > { %v214_v31 = vpop.xlane.xlu0 %213  ;;  %v211_v32 = vpop.xlane.xlu1 %210 }
  0xce   : > { %v234_v33 = vsel %vm232_vm1, %v222_v29, %v214_v31  ;;  %v233_v35 = vsel %vm232_vm1, %v221_v30, %v211_v32 }
  0xcf   : > { %622 = vmatpush3.msra.mxu0 %v234_v33 }
  0xd0   : > { %623 = vmatprep.subr.mxu0 %v805_v16 }
  0xd1   : > { %624 = vmatpush3.msra.mxu0 %v233_v35 }
  0xd2   : > { %626 = vmatmul.mubr.msk.f32.vlgmr.msra.gmra.mxu0 %vm237_vm2, %v225_v34 }
 0x192   : > { %v307_v37 = vpop.f32.mrf.mxu0 }
 0x193   : > { %v311_v38 = vmax.f32 %v307_v37, 0.0 }
 0x194   : > { %v627_v39 = vpop.f32.mrf.mxu0 }
 0x195   : > { %628 = vmatprep.subr.msk.mxu1 %vm325_vm4, %v311_v38 }
 0x196   : > { %629 = vmatpush3.msk.msra.mxu1 %vm325_vm4, %v311_v38 }
 0x197   : > { %631 = vmatmul.mubr.msk.f32.vlgmr.msra.gmra.mxu1 %vm312_vm3, %v227_v40 }
 0x198   : > { %633 = vmatprep.mubr.msk.f32.mxu1 %vm312_vm3, %v228_v41 }
 0x19b   : > { %634 = vmatmul.mubr.msk.f32.gmra.mxu1 %vm312_vm3, %v229_v42 }
 0x257   : > { %v632_v43 = vpop.f32.mrf.mxu1 }
 0x258   : > { %420 = vrot.lane.b32.xlu1 %v632_v43, %s807_s27 }
 0x259   : > { %v395_v44 = vpop.f32.mrf.mxu1 }
 0x25a   : > { %418 = vrot.lane.b32.xlu0 %v395_v44, %s807_s27 }
 0x25b   : > { %v635_v45 = vpop.f32.mrf.mxu1 }
 0x25d   : > { %v405_v46 = vpop.f32.mrf.mxu1 }
 0x25e   : > { %422 = vrot.lane.b32.xlu1 %v405_v46, %s807_s27 }
 0x262   : > { %424 = vrot.lane.b32.xlu1 %v635_v45, %s807_s27 }
 0x2ca   : > { %v421_v48 = vpop.permute.xlu1 %420 }
 0x2cb   : > { %v431_v49 = vadd.f32 %v632_v43, %v421_v48 }
 0x2cc   : > { %v419_v50 = vpop.permute.xlu0 %418 }
 0x2cd   : > { %v597_v51 = vmul.f32 -1.442695, %v431_v49  ;;  %v430_v52 = vadd.f32 %v419_v50, %v395_v44 }
 0x2cf   : > { %692 = vpow2.f32 %v597_v51  ;;  %v596_v53 = vmul.f32 -1.442695, %v430_v52 }
 0x2d0   : > { %v423_v54 = vpop.permute.xlu1 %422 }
 0x2d1   : > { %694 = vpow2.f32 %v596_v53  ;;  %v432_v55 = vadd.f32 %v423_v54, %v405_v46 }
 0x2d3   : > { %v598_v56 = vmul.f32 -1.442695, %v432_v55 }
 0x2d4   : > { %v425_v57 = vpop.permute.xlu1 %424 }
 0x2d5   : > { %696 = vpow2.f32 %v598_v56  ;;  %v433_v58 = vadd.f32 %v635_v45, %v425_v57 }
 0x2d7   : > { %v599_v59 = vmul.f32 -1.442695, %v433_v58 }
 0x2d9   : > { %698 = vpow2.f32 %v599_v59 }
 0x2dc   : > { %v693_v60 = vpop.eup %692 }
 0x2dd   : > { %v447_v61 = vadd.f32 1.0, %v693_v60 }
 0x2de   : > { %v695_v62 = vpop.eup %694 }
 0x2df   : > { %700 = vrcp.f32 %v447_v61  ;;  %v446_v63 = vadd.f32 1.0, %v695_v62 }
 0x2e1   : > { %702 = vrcp.f32 %v446_v63 }
 0x2e2   : > { %v697_v3 = vpop.eup %696 }
 0x2e3   : > { %v448_v4 = vadd.f32 1.0, %v697_v3 }
 0x2e5   : > { %704 = vrcp.f32 %v448_v4 }
 0x2e6   : > { %v699_v8 = vpop.eup %698 }
 0x2e7   : > { %v449_v9 = vadd.f32 1.0, %v699_v8 }
 0x2e9   : > { %706 = vrcp.f32 %v449_v9 }
 0x2ec   : > { %v701_v12 = vpop.eup %700 }
 0x2ed   : > { %465 = vperm.xlu1 %690, %v701_v12  }
 0x2ee   : > { %v703_v13 = vpop.eup %702 }
 0x2ef   : > { %460 = vperm.xlu0 %691, %v703_v13  }
 0x2f2   : > { %v705_v14 = vpop.eup %704 }
 0x2f3   : > { %470 = vperm.xlu1 %690, %v705_v14  }
 0x2f6   : > { %v707_v15 = vpop.eup %706 }
 0x2f7   : > { %475 = vperm.xlu0 %691, %v707_v15  }
 0x368   : > { %v466_v16 = vpop.permute.xlu1 %465 }
 0x369   : > { %v480_v17 = vmul.f32 %v466_v16, %v951_v6  ;;  %v481_v18 = vmul.f32 %v466_v16, %v953_v7 }
 0x36a   : > { %v461_v19 = vpop.permute.xlu0 %460 }
 0x36b   : > { %488 = vst [vmem:[%s188_s28 + $0x10] sm:$0xff] %v480_v17  ;;  %489 = vst [vmem:[%s188_s28 + $0x18] sm:$0xff] %v481_v18  ;;  %v478_v20 = vmul.f32 %v461_v19, %v959_v10  ;;  %v479_v21 = vmul.f32 %v461_v19, %v961_v11 }
 0x36d   : > { %486 = vst [vmem:[%s188_s28] sm:$0xff] %v478_v20  ;;  %487 = vst [vmem:[%s188_s28 + $0x8] sm:$0xff] %v479_v21 }
 0x36e   : > { %v471_v22 = vpop.permute.xlu1 %470 }
 0x36f   : > { %v482_v23 = vmul.f32 %v471_v22, %v943_v2  ;;  %v483_v6 = vmul.f32 %v471_v22, %v949_v5 }
 0x371   : > { %490 = vst [vmem:[%s188_s28 + $0x20] sm:$0xff] %v482_v23  ;;  %491 = vst [vmem:[%s188_s28 + $0x28] sm:$0xff] %v483_v6 }
 0x372   : > { %v476_v7 = vpop.permute.xlu0 %475 }
 0x373   : > { %v484_v10 = vmul.f32 %v476_v7, %v939_v0  ;;  %v485_v2 = vmul.f32 %v476_v7, %v941_v1 }
 0x375   : > { %492 = vst [vmem:[%s188_s28 + $0x30] sm:$0xff] %v484_v10  ;;  %493 = vst [vmem:[%s188_s28 + $0x38] sm:$0xff] %v485_v2 }
 0x376   : > { %749 = shalt.err (!%p746_p10)
}
 0x377   : > { %s750_s8 = scalar_lea.hbm %s1004_s11, 1024  ;;  %s754_s20 = scalar_lea.hbm %s1052_s3, 2048 }
 0x378   : > { %p751_p0 = scmp.ne.s32.totalorder %s1004_s11, %s750_s8  ;;  %p755_p1 = scmp.lt.s32.totalorder %s1004_s11, %s1052_s3 }
 0x379   : > { %p756_p3 = scmp.lt.s32.totalorder %s754_s20, %s750_s8 }
 0x37a   : > { %p752_p2 = pnand %p751_p0, %p1061_p12 }
 0x37b   : > { %p757_p6 = por %p756_p3, %p755_p1 }
 0x37c   : > { %p753_p9 = pneg %p752_p2 }
 0x37e   : > { %p758_p11 = pnand %p757_p6, %p753_p9 }
 0x380   : > { %761 = shalt.err (!%p758_p11)
}
 0x381   : > { %s810_s27 = smov 256   ;;  %s811_s28 = smov 16  }
 0x382   : > { %638 = dma.vmem_to_hbm [thread:$0]  (%p1061_p12), %s999_s29, 1024, %s1004_s11, %s495_s16, %s810_s27, %s810_s27, %s811_s28  }
 0x383 PF: > { %s523_s30 = sand.u32 1, %s788_s12   ;;  %p1062_p13 = scmp.ne.s32.totalorder %s1058_s25, 0 }
 0x384   : > { %p1063_p4 = scmp.ge.s32.totalorder %s800_s15, 2  ;;  %s524_s9 = scalar_lea.sflag [#allocation4], %s523_s30 }
 0x386   : > { %p645_p5 = pnand %p1063_p4, %p1062_p13 }
 0x388   : > { %p646_p7 = pneg %p645_p5 }
 0x38a   : > { %783 = dma.done.wait (%p646_p7), %s524_s9, 1024  }
 0x38b   : > { %785 = vsyncadd (%p646_p7), %s524_s9, 4294966272  ;;  %p16_p8 = scmp.ge.s32.totalorder %s857_s18, 4   ;;  %s1064_s12 = smov %s792_s13 }
 0x38c   : > { %s1065_s13 = smov %s796_s14  ;;  %s1066_s14 = smov %s869_s21 }
 0x38d   : > { %s1067_s15 = smov %s857_s18  ;;  %18 = sbr.rel (!%p16_p8) target bundleno = 5 (0x5), region = 77 }
 0x392   :  { %529 = vsyncpa [#allocation3], 1 }
 0x393   :  { %531 = vsyncpa [#allocation3 + $0x1], 1 }
 0x394   :  { %532 = vsyncpa [#allocation4], 1 }
 0x395   :  { %534 = vsyncpa [#allocation4 + $0x1], 1 }

</bundles_post_ra>
